<compile_context>
chip_gen: v7x
topology: tpu7x:2x2x1
jax: 0.10.0
libtpu: 0.0.40
codegen_flags: <defaults>
</compile_context>

<pallas_src>
import jax
import jax.numpy as jnp
from jax.experimental import pallas as pl
from jax.experimental.pallas import tpu as pltpu


def _round_up(x, m):
    return (x + m - 1) // m * m


# bf16 sublane tile is (16, 128): keep every row offset 16-aligned so the static
# ref slices inside the kernel never straddle a packed-sublane boundary.
_ROW_ALIGN = 16


def pack_lstm_params(w_ih, w_hh, b_ih, b_hh, w_lin, b_lin,
                     param_dtype=jnp.bfloat16):
    """One-time packing of all parameters into a single lane-dense slab.

    Gate columns are reordered from PyTorch's [i|f|g|o] to [i|f|o|g] so the
    kernel applies sigmoid to one contiguous (B, 3H) slice and tanh to (B, H).

    Slab layout (lane width L = 4*H, multiple of 128; row offsets 16-aligned):
      rows [off_wih, off_wih+I) : W_ih^T                   (I, 4H)
      rows [off_whh, off_whh+H) : W_hh^T                   (H, 4H)
      row   off_bg              : b_ih + b_hh              (1, 4H)
      rows [off_wl,  off_wl+H)  : W_lin^T zero-padded to L (H, L), valid lanes [0, O)
      row   off_bl              : b_lin zero-padded to L   (1, L)
    """
    fourH, I = w_ih.shape
    H = fourH // 4
    O = w_lin.shape[0]
    L = fourH
    assert L % 128 == 0, "4*hidden_size must be a multiple of 128 for this packing"
    assert O <= L, "output_size must fit within the 4*hidden_size lane width"

    def reorder(m):  # last-dim gate columns [i|f|g|o] -> [i|f|o|g]
        return jnp.concatenate(
            [m[..., :2 * H], m[..., 3 * H:4 * H], m[..., 2 * H:3 * H]], axis=-1)

    off_wih = 0
    off_whh = _round_up(off_wih + I, _ROW_ALIGN)
    off_bg = _round_up(off_whh + H, _ROW_ALIGN)
    off_wl = _round_up(off_bg + 1, _ROW_ALIGN)
    off_bl = _round_up(off_wl + H, _ROW_ALIGN)
    rows = _round_up(off_bl + 1, _ROW_ALIGN)

    slab = jnp.zeros((rows, L), jnp.float32)
    slab = slab.at[off_wih:off_wih + I, :].set(reorder(w_ih.T.astype(jnp.float32)))
    slab = slab.at[off_whh:off_whh + H, :].set(reorder(w_hh.T.astype(jnp.float32)))
    slab = slab.at[off_bg, :].set(reorder((b_ih + b_hh).astype(jnp.float32)))
    slab = slab.at[off_wl:off_wl + H, :O].set(w_lin.T.astype(jnp.float32))
    slab = slab.at[off_bl, :O].set(b_lin.astype(jnp.float32))
    slab = slab.astype(param_dtype)

    return slab, (off_wih, off_whh, off_bg, off_wl, off_bl)


def _make_kernel(I, H, O, offsets):
    off_wih, off_whh, off_bg, off_wl, off_bl = offsets
    L = 4 * H

    def kernel(x_ref, h0_ref, c0_ref, p_ref, y_ref, hn_ref, cn_ref):
        t = pl.program_id(0)

        # Initialize the carried state (h_n / c_n output refs double as the
        # recurrent state, VMEM-resident across the whole T grid).
        @pl.when(t == 0)
        def _():
            hn_ref[...] = h0_ref[...]
            cn_ref[...] = c0_ref[...]

        x = x_ref[0]            # (B, I) f32 — current timestep
        h = hn_ref[...]         # (B, H) f32 — carried state
        c = cn_ref[...]         # (B, H) f32

        # Static, zero-cost views into the VMEM-resident bf16 parameter slab.
        w_ih = p_ref[off_wih:off_wih + I, :]                       # (I, 4H) bf16
        w_hh = p_ref[off_whh:off_whh + H, :]                       # (H, 4H) bf16
        b_g = p_ref[off_bg:off_bg + 1, :].astype(jnp.float32)      # (1, 4H) f32
        w_l = p_ref[off_wl:off_wl + H, :]                          # (H, L)  bf16
        b_l = p_ref[off_bl:off_bl + 1, :].astype(jnp.float32)      # (1, L)  f32

        # Gate matmuls: bf16 MXU operands, f32 accumulation.  Two dots (instead
        # of a lane-concat [x|h]) — MXU has huge slack at these shapes.
        gates = (jnp.dot(x.astype(w_ih.dtype), w_ih,
                         preferred_element_type=jnp.float32)
                 + jnp.dot(h.astype(w_hh.dtype), w_hh,
                           preferred_element_type=jnp.float32)
                 + b_g)                                            # (B, 4H) [i|f|o|g]

        # All elementwise / transcendental math in f32.
        sig = jax.nn.sigmoid(gates[:, :3 * H])                     # (B, 3H)
        i_g = sig[:, 0 * H:1 * H]
        f_g = sig[:, 1 * H:2 * H]
        o_g = sig[:, 2 * H:3 * H]
        g_g = jnp.tanh(gates[:, 3 * H:4 * H])                      # (B, H)

        c_new = f_g * c + i_g * g_g
        h_new = o_g * jnp.tanh(c_new)

        # Linear + LogSoftmax on a lane-padded (B, L) tile; pad lanes -> -inf.
        logits = jnp.dot(h_new.astype(w_l.dtype), w_l,
                         preferred_element_type=jnp.float32) + b_l
        lane = jax.lax.broadcasted_iota(jnp.int32, logits.shape, 1)
        logits = jnp.where(lane < O, logits, -jnp.inf)
        m = jnp.max(logits, axis=-1, keepdims=True)
        lse = m + jnp.log(jnp.sum(jnp.exp(logits - m), axis=-1, keepdims=True))
        y = logits - lse                      # pad lanes = -inf, sliced off outside

        hn_ref[...] = h_new                   # carried to the next grid step
        cn_ref[...] = c_new
        y_ref[0] = y

    return kernel


def make_lstm_forward(input_size, hidden_size, output_size, offsets, slab_rows,
                      num_layers=1):
    """Returns a jitted forward(input1, hidden, c, packed_params) hot-path fn."""
    I, H, O = input_size, hidden_size, output_size
    L = 4 * H
    kernel = _make_kernel(I, H, O, offsets)

    @jax.jit
    def forward(input1, hidden, c, packed):
        B = input1.shape[0]
        # nn.LSTM input after unsqueeze(0): (seq=1, batch, input_size).
        x_seq = input1.reshape(1, B, I).astype(jnp.float32)
        h0 = hidden.reshape(B, H).astype(jnp.float32)
        c0 = c.reshape(B, H).astype(jnp.float32)
        T = x_seq.shape[0]

        y_seq, hn, cn = pl.pallas_call(
            kernel,
            out_shape=(
                jax.ShapeDtypeStruct((T, B, L), jnp.float32),   # per-step log-probs
                jax.ShapeDtypeStruct((B, H), jnp.float32),      # h_n
                jax.ShapeDtypeStruct((B, H), jnp.float32),      # c_n
            ),
            grid=(T,),
            in_specs=[
                pl.BlockSpec((1, B, I), lambda t: (t, 0, 0)),    # x_t streamed over T
                pl.BlockSpec((B, H), lambda t: (0, 0)),          # h0 (DMA'd once)
                pl.BlockSpec((B, H), lambda t: (0, 0)),          # c0 (DMA'd once)
                pl.BlockSpec((slab_rows, L), lambda t: (0, 0)),  # weight slab, VMEM-resident
            ],
            out_specs=[
                pl.BlockSpec((1, B, L), lambda t: (t, 0, 0)),
                pl.BlockSpec((B, H), lambda t: (0, 0)),          # carried state / accumulator
                pl.BlockSpec((B, H), lambda t: (0, 0)),
            ],
            compiler_params=pltpu.CompilerParams(
                dimension_semantics=("arbitrary",)),             # T carries h/c
        )(x_seq, h0, c0, packed)

        y = y_seq[:, :, :O]                                      # single slice HLO
        return (y,
                hn.reshape(num_layers, B, H),
                cn.reshape(num_layers, B, H))

    return forward


def _reference_forward(input1, hidden, c, params):
    """Pure-JAX f32 reference matching torch.nn.LSTM + Linear + LogSoftmax."""
    w_ih, w_hh, b_ih, b_hh, w_lin, b_lin = params
    B, _ = input1.shape
    H = w_hh.shape[1]
    h0 = hidden.reshape(B, H)
    c0 = c.reshape(B, H)
    gates = input1 @ w_ih.T + h0 @ w_hh.T + b_ih + b_hh
    i_g = jax.nn.sigmoid(gates[:, 0 * H:1 * H])
    f_g = jax.nn.sigmoid(gates[:, 1 * H:2 * H])
    g_g = jnp.tanh(gates[:, 2 * H:3 * H])
    o_g = jax.nn.sigmoid(gates[:, 3 * H:4 * H])
    c_new = f_g * c0 + i_g * g_g
    h_new = o_g * jnp.tanh(c_new)
    logits = h_new @ w_lin.T + b_lin
    logp = jax.nn.log_softmax(logits, axis=-1)
    return logp.reshape(1, B, -1), h_new.reshape(1, B, H), c_new.reshape(1, B, H)


if __name__ == "__main__":
    # Small shapes consistent with the module's forward (seq=1, batch=1).
    input_size, hidden_size, output_size, num_layers = 32, 32, 16, 1
    batch = 1

    key = jax.random.PRNGKey(0)
    ks = jax.random.split(key, 8)
    bound = 1.0 / (hidden_size ** 0.5)  # PyTorch default uniform init scale
    w_ih = jax.random.uniform(ks[0], (4 * hidden_size, input_size),
                              jnp.float32, -bound, bound)
    w_hh = jax.random.uniform(ks[1], (4 * hidden_size, hidden_size),
                              jnp.float32, -bound, bound)
    b_ih = jax.random.uniform(ks[2], (4 * hidden_size,), jnp.float32, -bound, bound)
    b_hh = jax.random.uniform(ks[3], (4 * hidden_size,), jnp.float32, -bound, bound)
    w_lin = jax.random.uniform(ks[4], (output_size, hidden_size),
                               jnp.float32, -bound, bound)
    b_lin = jax.random.uniform(ks[5], (output_size,), jnp.float32, -bound, bound)
    params = (w_ih, w_hh, b_ih, b_hh, w_lin, b_lin)

    x = jax.random.normal(ks[6], (batch, input_size), jnp.float32)
    # initHiddenAndC(): zeros of shape (num_layers, 1, hidden_size)
    h0 = jnp.zeros((num_layers, 1, hidden_size), jnp.float32)
    c0 = jnp.zeros((num_layers, 1, hidden_size), jnp.float32)

    # One-time parameter packing (hoisted out of the per-call hot path).
    packed, offsets = pack_lstm_params(*params)
    packed = jax.block_until_ready(packed)
    forward = make_lstm_forward(input_size, hidden_size, output_size,
                                offsets, packed.shape[0], num_layers)

    out, hn, cn = forward(x, h0, c0, packed)
    jax.block_until_ready((out, hn, cn))

    ref_out, ref_hn, ref_cn = _reference_forward(x, h0, c0, params)
    assert out.shape == (1, batch, output_size)
    assert hn.shape == (num_layers, batch, hidden_size)
    assert cn.shape == (num_layers, batch, hidden_size)
    # Tolerance relaxed vs the f32 reference because the weight slab / MXU
    # operands are bf16 (accumulation and all elementwise math remain f32).
    assert jnp.allclose(out, ref_out, atol=2e-2), float(jnp.max(jnp.abs(out - ref_out)))
    assert jnp.allclose(hn, ref_hn, atol=2e-2), float(jnp.max(jnp.abs(hn - ref_hn)))
    assert jnp.allclose(cn, ref_cn, atol=2e-2), float(jnp.max(jnp.abs(cn - ref_cn)))

    print("KERNEL_OK")
</pallas_src>

<mosaic_0001>
module attributes {stable_mosaic.version = 11 : i64} {
  func.func @kernel(%arg0: i32, %arg1: memref<1x1x32xf32, #tpu.memory_space<vmem>>, %arg2: memref<1x32xf32, #tpu.memory_space<vmem>>, %arg3: memref<1x32xf32, #tpu.memory_space<vmem>>, %arg4: memref<128x128xbf16, #tpu.memory_space<vmem>>, %arg5: memref<1x1x128xf32, #tpu.memory_space<vmem>>, %arg6: memref<1x32xf32, #tpu.memory_space<vmem>>, %arg7: memref<1x32xf32, #tpu.memory_space<vmem>>) attributes {dimension_semantics = [#tpu.dimension_semantics<arbitrary>], iteration_bounds = array<i64: 1>, scalar_prefetch = 0 : i64, scratch_operands = 0 : i64, tpu.core_type = #tpu.core_type<tc>, window_params = [{transform_indices = @transform_0, window_bounds = array<i64: 1, 1, 32>}, {pipeline_mode = #tpu.pipeline_mode<synchronous>, transform_indices = @transform_1, window_bounds = array<i64: 1, 32>}, {pipeline_mode = #tpu.pipeline_mode<synchronous>, transform_indices = @transform_2, window_bounds = array<i64: 1, 32>}, {pipeline_mode = #tpu.pipeline_mode<synchronous>, transform_indices = @transform_3, window_bounds = array<i64: 128, 128>}, {transform_indices = @transform_4, window_bounds = array<i64: 1, 1, 128>}, {pipeline_mode = #tpu.pipeline_mode<synchronous>, transform_indices = @transform_5, window_bounds = array<i64: 1, 32>}, {pipeline_mode = #tpu.pipeline_mode<synchronous>, transform_indices = @transform_6, window_bounds = array<i64: 1, 32>}]} {
    %c0_i32 = arith.constant 0 : i32
    %0 = arith.cmpi eq, %arg0, %c0_i32 : i32
    %1 = arith.extui %0 : i1 to i32
    %c0_i32_0 = arith.constant 0 : i32
    %2 = arith.cmpi ne, %1, %c0_i32_0 : i32
    scf.if %2 {
      %c0_26 = arith.constant 0 : index
      %c0_27 = arith.constant 0 : index
      %60 = vector.load %arg2[%c0_26, %c0_27] : memref<1x32xf32, #tpu.memory_space<vmem>>, vector<1x32xf32>
      %c0_28 = arith.constant 0 : index
      %c0_29 = arith.constant 0 : index
      %61 = vector.load %arg6[%c0_28, %c0_29] : memref<1x32xf32, #tpu.memory_space<vmem>>, vector<1x32xf32>
      tpu.vector_store %arg6[%c0_28, %c0_29], %60 {strides = array<i32>} : memref<1x32xf32, #tpu.memory_space<vmem>>, vector<1x32xf32>,
      %c0_30 = arith.constant 0 : index
      %c0_31 = arith.constant 0 : index
      %62 = vector.load %arg3[%c0_30, %c0_31] : memref<1x32xf32, #tpu.memory_space<vmem>>, vector<1x32xf32>
      %c0_32 = arith.constant 0 : index
      %c0_33 = arith.constant 0 : index
      %63 = vector.load %arg7[%c0_32, %c0_33] : memref<1x32xf32, #tpu.memory_space<vmem>>, vector<1x32xf32>
      tpu.vector_store %arg7[%c0_32, %c0_33], %62 {strides = array<i32>} : memref<1x32xf32, #tpu.memory_space<vmem>>, vector<1x32xf32>,
    } else {
    }
    %c0 = arith.constant 0 : index
    %c0_1 = arith.constant 0 : index
    %c0_2 = arith.constant 0 : index
    %3 = vector.load %arg1[%c0, %c0_1, %c0_2] : memref<1x1x32xf32, #tpu.memory_space<vmem>>, vector<1x1x32xf32>
    %4 = vector.shape_cast %3 : vector<1x1x32xf32> to vector<1x32xf32>
    %c0_3 = arith.constant 0 : index
    %c0_4 = arith.constant 0 : index
    %5 = vector.load %arg6[%c0_3, %c0_4] : memref<1x32xf32, #tpu.memory_space<vmem>>, vector<1x32xf32>
    %c0_5 = arith.constant 0 : index
    %c0_6 = arith.constant 0 : index
    %6 = vector.load %arg7[%c0_5, %c0_6] : memref<1x32xf32, #tpu.memory_space<vmem>>, vector<1x32xf32>
    %c0_7 = arith.constant 0 : index
    %c0_8 = arith.constant 0 : index
    %7 = vector.load %arg4[%c0_7, %c0_8] : memref<128x128xbf16, #tpu.memory_space<vmem>>, vector<32x128xbf16>
    %c32 = arith.constant 32 : index
    %c0_9 = arith.constant 0 : index
    %8 = vector.load %arg4[%c32, %c0_9] : memref<128x128xbf16, #tpu.memory_space<vmem>>, vector<32x128xbf16>
    %c64 = arith.constant 64 : index
    %c0_10 = arith.constant 0 : index
    %9 = vector.load %arg4[%c64, %c0_10] : memref<128x128xbf16, #tpu.memory_space<vmem>>, vector<1x128xbf16>
    %10 = arith.extf %9 : vector<1x128xbf16> to vector<1x128xf32>
    %c80 = arith.constant 80 : index
    %c0_11 = arith.constant 0 : index
    %11 = vector.load %arg4[%c80, %c0_11] : memref<128x128xbf16, #tpu.memory_space<vmem>>, vector<32x128xbf16>
    %c112 = arith.constant 112 : index
    %c0_12 = arith.constant 0 : index
    %12 = vector.load %arg4[%c112, %c0_12] : memref<128x128xbf16, #tpu.memory_space<vmem>>, vector<1x128xbf16>
    %13 = arith.extf %12 : vector<1x128xbf16> to vector<1x128xf32>
    %14 = arith.truncf %4 : vector<1x32xf32> to vector<1x32xbf16>
    %cst = arith.constant dense<0.000000e+00> : vector<1x128xf32>
    %15 = tpu.matmul %14, %7, %cst {dimension_numbers = #tpu.dot_dimension_numbers<[1], [0], [0], [1], [0, 0, 1, 1], [], []>} : vector<1x32xbf16>, vector<32x128xbf16>, vector<1x128xf32> -> vector<1x128xf32>
    %16 = arith.truncf %5 : vector<1x32xf32> to vector<1x32xbf16>
    %cst_13 = arith.constant dense<0.000000e+00> : vector<1x128xf32>
    %17 = tpu.matmul %16, %8, %cst_13 {dimension_numbers = #tpu.dot_dimension_numbers<[1], [0], [0], [1], [0, 0, 1, 1], [], []>} : vector<1x32xbf16>, vector<32x128xbf16>, vector<1x128xf32> -> vector<1x128xf32>
    %18 = arith.addf %15, %17 : vector<1x128xf32>
    %19 = arith.addf %18, %10 : vector<1x128xf32>
    %20 = vector.extract_strided_slice %19 {offsets = [0, 0], sizes = [1, 96], strides = [1, 1]} : vector<1x128xf32> to vector<1x96xf32>
    %21 = arith.negf %20 : vector<1x96xf32>
    %22 = math.exp %21 : vector<1x96xf32>
    %cst_14 = arith.constant 1.000000e+00 : f32
    %23 = vector.broadcast %cst_14 : f32 to vector<1x96xf32>
    %24 = arith.addf %23, %22 : vector<1x96xf32>
    %25 = arith.divf %23, %24 : vector<1x96xf32>
    %26 = vector.extract_strided_slice %25 {offsets = [0, 0], sizes = [1, 32], strides = [1, 1]} : vector<1x96xf32> to vector<1x32xf32>
    %27 = vector.extract_strided_slice %25 {offsets = [0, 32], sizes = [1, 32], strides = [1, 1]} : vector<1x96xf32> to vector<1x32xf32>
    %28 = vector.extract_strided_slice %25 {offsets = [0, 64], sizes = [1, 32], strides = [1, 1]} : vector<1x96xf32> to vector<1x32xf32>
    %29 = vector.extract_strided_slice %19 {offsets = [0, 96], sizes = [1, 32], strides = [1, 1]} : vector<1x128xf32> to vector<1x32xf32>
    %30 = math.tanh %29 : vector<1x32xf32>
    %31 = arith.mulf %27, %6 : vector<1x32xf32>
    %32 = arith.mulf %26, %30 : vector<1x32xf32>
    %33 = arith.addf %31, %32 : vector<1x32xf32>
    %34 = math.tanh %33 : vector<1x32xf32>
    %35 = arith.mulf %28, %34 : vector<1x32xf32>
    %36 = arith.truncf %35 : vector<1x32xf32> to vector<1x32xbf16>
    %cst_15 = arith.constant dense<0.000000e+00> : vector<1x128xf32>
    %37 = tpu.matmul %36, %11, %cst_15 {dimension_numbers = #tpu.dot_dimension_numbers<[1], [0], [0], [1], [0, 0, 1, 1], [], []>} : vector<1x32xbf16>, vector<32x128xbf16>, vector<1x128xf32> -> vector<1x128xf32>
    %38 = arith.addf %37, %13 : vector<1x128xf32>
    %39 = tpu.iota {dimensions = array<i32: 1>} : vector<1x128xi32>
    %c16_i32 = arith.constant 16 : i32
    %40 = vector.broadcast %c16_i32 : i32 to vector<1x128xi32>
    %41 = arith.cmpi slt, %39, %40 : vector<1x128xi32>
    %cst_16 = arith.constant 0xFF800000 : f32
    %42 = vector.broadcast %cst_16 : f32 to vector<1x128xf32>
    %43 = arith.select %41, %38, %42 : vector<1x128xi1>, vector<1x128xf32>
    %cst_17 = arith.constant dense<0xFF800000> : vector<1xf32>
    %44 = vector.multi_reduction <maximumf>, %43, %cst_17 [1] : vector<1x128xf32> to vector<1xf32>
    %45 = vector.shape_cast %44 : vector<1xf32> to vector<1x1xf32>
    %46 = vector.broadcast %45 : vector<1x1xf32> to vector<1x128xf32>
    %47 = arith.subf %43, %46 : vector<1x128xf32>
    %48 = math.exp %47 : vector<1x128xf32>
    %cst_18 = arith.constant dense<0.000000e+00> : vector<1xf32>
    %49 = vector.multi_reduction <add>, %48, %cst_18 [1] : vector<1x128xf32> to vector<1xf32>
    %50 = vector.shape_cast %49 : vector<1xf32> to vector<1x1xf32>
    %51 = math.log %50 : vector<1x1xf32>
    %52 = arith.addf %45, %51 : vector<1x1xf32>
    %53 = vector.broadcast %52 : vector<1x1xf32> to vector<1x128xf32>
    %54 = arith.subf %43, %53 : vector<1x128xf32>
    %c0_19 = arith.constant 0 : index
    %c0_20 = arith.constant 0 : index
    %55 = vector.load %arg6[%c0_19, %c0_20] : memref<1x32xf32, #tpu.memory_space<vmem>>, vector<1x32xf32>
    tpu.vector_store %arg6[%c0_19, %c0_20], %35 {strides = array<i32>} : memref<1x32xf32, #tpu.memory_space<vmem>>, vector<1x32xf32>,
    %c0_21 = arith.constant 0 : index
    %c0_22 = arith.constant 0 : index
    %56 = vector.load %arg7[%c0_21, %c0_22] : memref<1x32xf32, #tpu.memory_space<vmem>>, vector<1x32xf32>
    tpu.vector_store %arg7[%c0_21, %c0_22], %33 {strides = array<i32>} : memref<1x32xf32, #tpu.memory_space<vmem>>, vector<1x32xf32>,
    %c0_23 = arith.constant 0 : index
    %c0_24 = arith.constant 0 : index
    %c0_25 = arith.constant 0 : index
    %57 = vector.load %arg5[%c0_23, %c0_24, %c0_25] : memref<1x1x128xf32, #tpu.memory_space<vmem>>, vector<1x1x128xf32>
    %58 = vector.shape_cast %57 : vector<1x1x128xf32> to vector<1x128xf32>
    %59 = vector.shape_cast %54 : vector<1x128xf32> to vector<1x1x128xf32>
    tpu.vector_store %arg5[%c0_23, %c0_24, %c0_25], %59 {strides = array<i32>} : memref<1x1x128xf32, #tpu.memory_space<vmem>>, vector<1x1x128xf32>,
    return
  }
  func.func @transform_0(%arg0: i32) -> (i32, i32, i32) {
    %c0_i32 = arith.constant 0 : i32
    %c0_i32_0 = arith.constant 0 : i32
    %c0_i32_1 = arith.constant 0 : i32
    return %arg0, %c0_i32, %c0_i32_0 : i32, i32, i32
  }
  func.func @transform_1(%arg0: i32) -> (i32, i32) {
    %c0_i32 = arith.constant 0 : i32
    %c0_i32_0 = arith.constant 0 : i32
    %c0_i32_1 = arith.constant 0 : i32
    return %c0_i32, %c0_i32_0 : i32, i32
  }
  func.func @transform_2(%arg0: i32) -> (i32, i32) {
    %c0_i32 = arith.constant 0 : i32
    %c0_i32_0 = arith.constant 0 : i32
    %c0_i32_1 = arith.constant 0 : i32
    return %c0_i32, %c0_i32_0 : i32, i32
  }
  func.func @transform_3(%arg0: i32) -> (i32, i32) {
    %c0_i32 = arith.constant 0 : i32
    %c0_i32_0 = arith.constant 0 : i32
    %c0_i32_1 = arith.constant 0 : i32
    return %c0_i32, %c0_i32_0 : i32, i32
  }
  func.func @transform_4(%arg0: i32) -> (i32, i32, i32) {
    %c0_i32 = arith.constant 0 : i32
    %c0_i32_0 = arith.constant 0 : i32
    %c0_i32_1 = arith.constant 0 : i32
    return %arg0, %c0_i32, %c0_i32_0 : i32, i32, i32
  }
  func.func @transform_5(%arg0: i32) -> (i32, i32) {
    %c0_i32 = arith.constant 0 : i32
    %c0_i32_0 = arith.constant 0 : i32
    %c0_i32_1 = arith.constant 0 : i32
    return %c0_i32, %c0_i32_0 : i32, i32
  }
  func.func @transform_6(%arg0: i32) -> (i32, i32) {
    %c0_i32 = arith.constant 0 : i32
    %c0_i32_0 = arith.constant 0 : i32
    %c0_i32_1 = arith.constant 0 : i32
    return %c0_i32, %c0_i32_0 : i32, i32
  }
}

</mosaic_0001>

<bundles_post_ra>
// kernel: forward.1
= control target key start
LH: loop header
LB: loop body
LE: loop exit
PB: predicated region body
PF: predicated region fallthrough
CT: control target
= control target key end

     0   :  { %12 = vsyncpa [#allocation3], 0  ;;  %s641_s0 = inlined_call_operand.vmem [shape: f32[1,1,32], index: 0, kind: input, shape index: {}]   ;;  %s642_s1 = inlined_call_operand.vmem [shape: f32[1,32], index: 1, kind: input, shape index: {}]   ;;  %s643_s2 = inlined_call_operand.vmem [shape: f32[1,32], index: 2, kind: input, shape index: {}]   ;;  %s644_s3 = inlined_call_operand.hbm [shape: bf16[128,128], index: 3, kind: input, shape index: {}]   ;;  %s645_s4 = inlined_call_operand.hbm [shape: f32[1,1,128], index: 4, kind: output, shape index: {0}]   ;;  %s646_s5 = inlined_call_operand.hbm [shape: f32[1,32], index: 5, kind: output, shape index: {1}]   ;;  %s647_s6 = inlined_call_operand.hbm [shape: f32[1,32], index: 6, kind: output, shape index: {2}]  }
   0x1   :  { %13 = vsyncpa [#allocation4], 0 }
   0x2   :  { %14 = vsyncpa [#allocation7], 0  ;;  %s508_s21 = smov [#allocation2]   ;;  %s414_s25 = scalar_lea.hbm %s644_s3, 1024 }
   0x3   :  { %s26_s22 = sshll.u32 %s508_s21, 4  ;;  %p415_p0 = scmp.ne.s32.totalorder %s644_s3, %s414_s25  ;;  %s27_s22 = int_to_ptr.vmem [resolvable:$true] %s26_s22 }
   0x4   :  { %p418_p1 = scmp.lt.u32.totalorder %s414_s25, %s644_s3 }
   0x6   :  { %p420_p2 = pnand %p418_p1, %p415_p0 }
   0x8   :  { %423 = shalt.err (!%p420_p2)
}
   0x9   :  { %s424_s30 = scalar_lea.vmem %s27_s22, 1024  ;;  %p429_p4 = scmp.lt.s32.totalorder %s27_s22, %s27_s22 }
   0xa   :  { %p425_p3 = scmp.ne.s32.totalorder %s27_s22, %s424_s30  ;;  %p430_p5 = scmp.lt.s32.totalorder %s424_s30, %s424_s30 }
   0xc   :  { %p431_p6 = por %p430_p5, %p429_p4 }
   0xe   :  { %p432_p7 = pnand %p431_p6, %p425_p3 }
  0x10   :  { %435 = shalt.err (!%p432_p7)
}
  0x11   :  { %s509_s7 = smov 64   ;;  %s510_s8 = smov 4  }
  0x12   :  { %32 = dma.hbm_to_vmem [thread:$0]  %s644_s3, 1024, %s27_s22, [#allocation3], %s509_s7, %s509_s7, %s510_s8  }
  0x13   :  { %502 = dma.done.wait [#allocation3], 1024  }
  0x14   :  { %503 = vsyncadd [#allocation3], 4294966272  ;;  %v511_v0 = vmov 0.0   ;;  %vm512_vm0 = vmmov 0   ;;  %v396_v1 = vld [vmem:[#allocation2] sm:$0xff]   ;;  %v397_v2 = vld [vmem:[#allocation2 + $0x10] sm:$0xff]   ;;  %v270_v42 = vlaneseq }
  0x15   :  { %370 = vmatprep.subr.bf16.mxu1 %v511_v0  ;;  %362 = vmatprep.subr.bf16.mxu0 %v511_v0  ;;  %v398_v3 = vld [vmem:[#allocation2 + $0x8] sm:$0xff]   ;;  %vm42_vm1 = vcmask 253952   ;;  %v399_v4 = vld [vmem:[#allocation2 + $0x18] sm:$0xff]   ;;  %v46_v5 = vld [vmem:[%s641_s0] sm:$0x1]  ;;  %vm79_vm2 = vcmask 261120  }
  0x16   :  { %374 = vmatprep.mubr.msk.bf16.mxu1 %vm512_vm0, %v511_v0  ;;  %366 = vmatprep.mubr.msk.bf16.mxu0 %vm512_vm0, %v511_v0  ;;  %v41_v6 = vld [vmem:[%s642_s1] sm:$0x1]  ;;  %v65_v7 = vpack.c.bf16 %v46_v5, %v46_v5  ;;  %s513_s1 = smov 32   ;;  %v400_v35 = vld [vmem:[#allocation2 + $0x28] sm:$0xff]   ;;  %v401_v36 = vld [vmem:[#allocation2 + $0x30] sm:$0xff]   ;;  %v271_v44 = vand.u32 127, %v270_v42 }
  0x17   :  { %371 = vmatpush3.bf16.msra.mxu1 %v396_v1  ;;  %363 = vmatpush3.bf16.msra.mxu0 %v397_v2  ;;  %43 = vst.msk [vmem:[#allocation6] sm:$0x1] %vm42_vm1, %v41_v6  ;;  %v44_v10 = vld [vmem:[%s643_s2] sm:$0x1]  ;;  %v63_v43 = vld [vmem:[#allocation2 + $0x38] sm:$0x1] }
  0x18   :  { %372 = vmatprep.subr.bf16.mxu1 %v511_v0  ;;  %364 = vmatprep.subr.bf16.mxu0 %v511_v0  ;;  %45 = vst.msk [vmem:[#allocation8] sm:$0x1] %vm42_vm1, %v44_v10  ;;  %v57_v13 = vld [vmem:[#allocation2 + $0x20] sm:$0x1]  ;;  %v64_v45 = vunpack.c.l.bf16 %v63_v43  ;;  %vm272_vm3 = vcmp.lt.s32.totalorder %v271_v44, 16  ;;  %vm274_vm4 = vcmask 1040384  }
  0x19   :  { %v58_v16 = vunpack.c.l.bf16 %v57_v13  ;;  %s514_s2 = smov 96   ;;  %s515_s15 = smov [#allocation6]  }
  0x1a   :  { %s316_s16 = sshll.u32 %s515_s15, 4  ;;  %s516_s17 = smov [#allocation8]   ;;  %s317_s16 = int_to_ptr.vmem [resolvable:$true] %s316_s16 }
  0x1b   :  { %373 = vmatpush3.bf16.msra.mxu1 %v398_v3  ;;  %365 = vmatpush3.bf16.msra.mxu0 %v399_v4  ;;  %s326_s18 = sshll.u32 %s516_s17, 4  ;;  %s436_s19 = scalar_lea.vmem %s317_s16, 16  ;;  %s596_s18 = int_to_ptr.vmem [resolvable:$true] %s326_s18 }
  0x1c   :  { %378 = vmatprep.subr.bf16.mxu0 %v511_v0  ;;  %p437_p8 = scmp.ne.s32.totalorder %s317_s16, %s436_s19  ;;  %s440_s20 = scalar_lea.vmem %s317_s16, 32 }
  0x1d   :  { %p441_p9 = scmp.lt.s32.totalorder %s317_s16, %s317_s16  ;;  %p442_p10 = scmp.lt.s32.totalorder %s440_s20, %s436_s19 }
  0x1e   :  { %375 = vmatmul.mubr.msk.bf16.vlgmr.msra.gmra.mrb[0].mxu1 %vm79_vm2, %v65_v7  ;;  %v47_v8 = vld [vmem:[#allocation6] sm:$0x1] }
  0x1f   :  { %v66_v9 = vpack.c.bf16 %v47_v8, %v47_v8  ;;  %v349_v24 = vld [vmem:[#allocation8] ss:$0 sm:$0xff]  ;;  %p443_p11 = por %p442_p10, %p441_p9 }
  0x21   :  { %367 = vmatmul.mubr.msk.bf16.vlgmr.msra.gmra.mrb[0].mxu0 %vm79_vm2, %v66_v9  ;;  %p444_p12 = pnand %p443_p11, %p437_p8 }
  0x22   :  { %382 = vmatprep.mubr.msk.bf16.mxu0 %vm512_vm0, %v511_v0  ;;  %379 = vmatpush3.bf16.msra.mxu0 %v400_v35 }
  0x23   :  { %380 = vmatprep.subr.bf16.mxu0 %v511_v0 }
  0x26   :  { %381 = vmatpush3.bf16.msra.mxu0 %v401_v36 }
  0xf1   :  { %v172_v11 = vpop.f32.mrb[0].mxu1 }
  0xf2   :  { %v376_v12 = vpop.f32.mrb[1].mxu1 }
  0xf3   :  { %v175_v14 = vpop.f32.mrb[2].mxu1 }
  0xf4   :  { %v377_v15 = vpop.f32.mrb[3].mxu1  ;;  %v117_v17 = vpop.f32.mrb[0].mxu0 }
  0xf5   :  { %v173_v18 = vadd.f32 %v172_v11, %v117_v17  ;;  %v368_v19 = vpop.f32.mrb[1].mxu0 }
  0xf6   :  { %v120_v20 = vpop.f32.mrb[2].mxu0 }
  0xf7   :  { %v178_v21 = vadd.f32 %v173_v18, %v58_v16  ;;  %v369_v22 = vpop.f32.mrb[3].mxu0 }
  0xf9   :  { %402 = vtanh.f32 %v178_v21  ;;  %v348_v25 = vmul.f32 -1.442695, %v178_v21 }
  0xfb   :  { %404 = vpow2.f32 %v348_v25 }
 0x103   :  { %v403_v23 = vpop.eup %402 }
 0x104   :  { %196 = vrot.lane.b32.xlu0 %v403_v23, %s513_s1 }
 0x105   :  { %v405_v26 = vpop.eup %404 }
 0x106   :  { %v182_v27 = vadd.f32 1.0, %v405_v26 }
 0x108   :  { %191 = vrot.lane.b32.xlu0 %v349_v24, %s513_s1  ;;  %406 = vrcp.f32 %v182_v27 }
 0x112   :  { %v407_v28 = vpop.eup %406 }
 0x176   :  { %v197_v29 = vpop.permute.xlu0 %196 }
 0x177   :  { %v199_v30 = vmul.f32 %v407_v28, %v197_v29 }
 0x179   :  { %201 = vrot.lane.b32.xlu1 %v199_v30, %s513_s1 }
 0x17a   :  { %v192_v31 = vpop.permute.xlu0 %191 }
 0x17b   :  { %v194_v32 = vmul.f32 %v407_v28, %v192_v31 }
 0x1eb   :  { %v202_v33 = vpop.permute.xlu1 %201 }
 0x1ec   :  { %v204_v34 = vadd.f32 %v202_v33, %v194_v32 }
 0x1ee   :  { %408 = vtanh.f32 %v204_v34 }
 0x1f8   :  { %v409_v37 = vpop.eup %408 }
 0x1f9   :  { %207 = vrot.lane.b32.xlu1 %v409_v37, %s513_s1 }
 0x26b   :  { %v208_v38 = vpop.permute.xlu1 %207 }
 0x26c   :  { %v210_v39 = vmul.f32 %v407_v28, %v208_v38 }
 0x26e   :  { %v211_v40 = vpack.c.bf16 %v210_v39, %v210_v39 }
 0x270   :  { %213 = vrot.lane.b32.xlu0 %v211_v40, %s509_s7 }
 0x2e2   :  { %v214_v41 = vpop.permute.xlu0 %213 }
 0x2e3   :  { %383 = vmatmul.mubr.msk.bf16.vlgmr.msra.gmra.mrb[4].mxu0 %vm79_vm2, %v214_v41 }
 0x3b6   :  { %v264_v46 = vpop.f32.mrb[4].mxu0 }
 0x3b7   :  { %v265_v47 = vadd.f32 %v264_v46, %v64_v45  ;;  %v384_v48 = vpop.f32.mrb[5].mxu0 }
 0x3b8   :  { %v267_v49 = vpop.f32.mrb[6].mxu0 }
 0x3b9   :  { %v273_v50 = vsel %vm272_vm3, %v265_v47, -inf  ;;  %v385_v51 = vpop.f32.mrb[7].mxu0 }
 0x3ba   :  { %v275_v52 = vsel %vm274_vm4, %v273_v50, -inf }
 0x3bb   :  { %276 = vmax.xlane.f32.xlu1 %v275_v52 }
 0x3cc   :  { %295 = vrot.lane.b32.xlu1 %v204_v34, %s514_s2 }
 0x448   :  { %v277_v53 = vpop.xlane.xlu1 %276 }
 0x449   :  { %v278_v54 = vsub.f32 %v273_v50, %v277_v53 }
 0x44b   :  { %v279_v55 = vmul.f32 1.442695, %v278_v54 }
 0x44c   :  { %v296_v56 = vpop.permute.xlu1 %295 }
 0x44d   :  { %410 = vpow2.f32 %v279_v55  ;;  %298 = vst.msk [vmem:[#allocation8] sm:$0x1] %vm42_vm1, %v296_v56 }
 0x457   :  { %v411_v57 = vpop.eup %410 }
 0x458   :  { %v281_v58 = vsel %vm274_vm4, %v411_v57, 0.0 }
 0x459   :  { %282 = vadd.xlane.f32.xlu0 %v281_v58 }
 0x46f   :  { %289 = vrot.lane.b32.xlu0 %v210_v39, %s509_s7 }
 0x4e6   :  { %v283_v59 = vpop.xlane.xlu0 %282 }
 0x4e7   :  { %412 = vlog2.f32 %v283_v59 }
 0x4ea   :  { %v290_v60 = vpop.permute.xlu0 %289 }
 0x4eb   :  { %293 = vst.msk [vmem:[#allocation6] sm:$0x1] %vm42_vm1, %v290_v60 }
 0x4ec   :  { %447 = shalt.err (!%p444_p12)
}
 0x4ed   :  { %s448_s23 = scalar_lea.hbm %s646_s5, 16 }
 0x4ee   :  { %p449_p13 = scmp.ne.s32.totalorder %s646_s5, %s448_s23  ;;  %p452_p0 = scmp.lt.u32.totalorder %s448_s23, %s646_s5 }
 0x4f0   :  { %p454_p1 = pnand %p452_p0, %p449_p13 }
 0x4f2   :  { %457 = shalt.err (!%p454_p1)
}
 0x4f3   :  { %319 = dma.vmem_to_hbm [thread:$0]  %s317_s16, 16, %s646_s5, [#allocation7]  }
 0x4f4   :  { %s458_s30 = scalar_lea.vmem %s596_s18, 16  ;;  %s462_s7 = scalar_lea.vmem %s596_s18, 32 }
 0x4f5   :  { %p459_p2 = scmp.ne.s32.totalorder %s596_s18, %s458_s30  ;;  %p463_p3 = scmp.lt.s32.totalorder %s596_s18, %s596_s18 }
 0x4f6   :  { %p464_p4 = scmp.lt.s32.totalorder %s462_s7, %s458_s30 }
 0x4f8   :  { %p465_p5 = por %p464_p4, %p463_p3 }
 0x4fa   :  { %p466_p6 = pnand %p465_p5, %p459_p2 }
 0x4fc   :  { %469 = shalt.err (!%p466_p6)
}
 0x4fd   :  { %s470_s10 = scalar_lea.hbm %s647_s6, 16 }
 0x4fe   :  { %p471_p7 = scmp.ne.s32.totalorder %s647_s6, %s470_s10  ;;  %p474_p8 = scmp.lt.u32.totalorder %s470_s10, %s647_s6 }
 0x500   :  { %p476_p9 = pnand %p474_p8, %p471_p7 }
 0x502   :  { %479 = shalt.err (!%p476_p9)
}
 0x503   :  { %329 = dma.vmem_to_hbm [thread:$0]  %s596_s18, 16, %s647_s6, [#allocation7]   ;;  %v413_v61 = vpop.eup %412 }
 0x504   :  { %v285_v62 = vmul.f32 0.6931472, %v413_v61  ;;  %s517_s14 = smov [#allocation5]  }
 0x505   :  { %s306_s1 = sshll.u32 %s517_s14, 4  ;;  %s307_s1 = int_to_ptr.vmem [resolvable:$true] %s306_s1 }
 0x506   :  { %v286_v63 = vadd.f32 %v285_v62, %v277_v53  ;;  %s480_s2 = scalar_lea.vmem %s307_s1, 16  ;;  %s484_s15 = scalar_lea.vmem %s307_s1, 32 }
 0x507   :  { %p481_p10 = scmp.ne.s32.totalorder %s307_s1, %s480_s2  ;;  %p485_p11 = scmp.lt.s32.totalorder %s307_s1, %s307_s1 }
 0x508   :  { %v287_v0 = vsub.f32 %v273_v50, %v286_v63  ;;  %p486_p12 = scmp.lt.s32.totalorder %s484_s15, %s480_s2 }
 0x50a   :  { %299 = vst [vmem:[#allocation5] sm:$0x1] %v287_v0  ;;  %p487_p13 = por %p486_p12, %p485_p11 }
 0x50c   :  { %p488_p0 = pnand %p487_p13, %p481_p10 }
 0x50e   :  { %491 = shalt.err (!%p488_p0)
}
 0x50f   :  { %s492_s6 = scalar_lea.hbm %s645_s4, 16 }
 0x510   :  { %p493_p1 = scmp.ne.s32.totalorder %s645_s4, %s492_s6  ;;  %p496_p2 = scmp.lt.u32.totalorder %s492_s6, %s645_s4 }
 0x512   :  { %p498_p3 = pnand %p496_p2, %p493_p1 }
 0x514   :  { %501 = shalt.err (!%p498_p3)
}
 0x515   :  { %309 = dma.vmem_to_hbm [thread:$0]  %s307_s1, 16, %s645_s4, [#allocation4]  }
 0x516   :  { %504 = dma.done.wait [#allocation4], 16  }
 0x517   :  { %505 = vsyncadd [#allocation4], 4294967280 }
 0x518   :  { %506 = dma.done.wait [#allocation7], 32  }
 0x519   :  { %507 = vsyncadd [#allocation7], 4294967264 }
 0x51a   :  { %339 = vsyncpa [#allocation3], 1 }
 0x51b   :  { %340 = vsyncpa [#allocation4], 1 }
 0x51c   :  { %341 = vsyncpa [#allocation7], 1 }

</bundles_post_ra>
